<compile_context>
chip_gen: v6e
topology: v6e:2x2x1
jax: 0.10.0
libtpu: 0.0.40
codegen_flags: <defaults>
</compile_context>

<pallas_src>
import functools

import jax
import jax.numpy as jnp
from jax.experimental import pallas as pl
from jax.experimental.pallas import tpu as pltpu


def _iou_loss_kernel(x_ref, t_ref, o_ref, *, n_valid, tile_n, n_cls):
    """One row-tile: per-row IoU written to o_ref (rows >= n_valid zeroed)."""
    i = pl.program_id(0)

    x = jax.nn.sigmoid(x_ref[...].astype(jnp.float32))          # (tile_n, C)
    tgt = t_ref[...]                                             # (tile_n, 1) i32

    # one-hot algebra: inter[n] = s[n, tgt[n]],  sum_c one_hot[n, c] = 1
    cls_idx = jax.lax.broadcasted_iota(jnp.int32, (tile_n, n_cls), 1)
    inter = jnp.sum(jnp.where(cls_idx == tgt, x, 0.0), axis=1, keepdims=True)
    union = jnp.sum(x, axis=1, keepdims=True) + 1.0 - inter
    iou = (inter + 1e-6) / (union + 1e-6)                        # (tile_n, 1)

    # Zero rows past the true batch size (ragged tail block reads are garbage;
    # this keeps any NaN there from ever reaching HBM).
    row_idx = jax.lax.broadcasted_iota(jnp.int32, (tile_n, 1), 0) + i * tile_n
    o_ref[...] = jnp.where(row_idx < n_valid, iou, 0.0)


def iou_loss(inputs, targets, *, tile_cap=2048,
             vmem_limit_bytes=32 * 1024 * 1024):
    """inputs: (N, C) float logits; targets: (N,) or (1, N) integer class ids."""
    if targets.ndim == 2 and targets.shape[0] == 1:
        targets = targets[0]
    N, C = inputs.shape
    assert targets.shape == (N,), (targets.shape, N)

    x = inputs                              # keep original dtype; cast in-kernel
    t = targets.astype(jnp.int32)

    # Sublane tiles must be a multiple of 8 rows; only pad when N < 8
    # (negligible). For larger N we rely on ragged tail blocks + in-kernel mask.
    if N < 8:
        pad = 8 - N
        x = jnp.pad(x, ((0, pad), (0, 0)))
        t = jnp.pad(t, (0, pad))
    Np = x.shape[0]
    t = t.reshape(Np, 1)

    # Row-tile sizing: biggest tile whose double-buffered input block plus the
    # in-kernel f32 temporaries stays a few MiB under the scoped VMEM limit
    # (valid on v5e/v6e 128 MiB physical and v7x 64 MiB physical).
    budget = min(vmem_limit_bytes // 2, 12 * 1024 * 1024)
    bytes_per_row = (2 * x.dtype.itemsize + 3 * 4) * C + 32
    tile_n = max(8, min(tile_cap, budget // bytes_per_row, Np))
    tile_n = (tile_n // 8) * 8

    grid = (pl.cdiv(Np, tile_n),)
    kernel = functools.partial(_iou_loss_kernel,
                               n_valid=N, tile_n=tile_n, n_cls=C)

    per_row_iou = pl.pallas_call(
        kernel,
        out_shape=jax.ShapeDtypeStruct((Np, 1), jnp.float32),
        grid_spec=pltpu.PrefetchScalarGridSpec(
            num_scalar_prefetch=0,
            grid=grid,
            in_specs=[
                pl.BlockSpec((tile_n, C), lambda i: (i, 0)),
                pl.BlockSpec((tile_n, 1), lambda i: (i, 0)),
            ],
            out_specs=pl.BlockSpec((tile_n, 1), lambda i: (i, 0)),
        ),
        compiler_params=pltpu.CompilerParams(
            dimension_semantics=("parallel",),
            vmem_limit_bytes=vmem_limit_bytes,
        ),
    )(x, t)

    # Tiny final reduction in JAX (rows >= N are either zeroed or never written).
    return 1.0 - jnp.sum(per_row_iou) / jnp.float32(N)


def iou_loss_ref(inputs, targets):
    """Pure-JAX reference mirroring the PyTorch code."""
    s = jax.nn.sigmoid(inputs.astype(jnp.float32))
    oh = jax.nn.one_hot(targets, s.shape[1], dtype=jnp.float32)[None]  # (1,N,C)
    inter = jnp.sum(s * oh, axis=(0, 2))
    union = jnp.sum(s + oh, axis=(0, 2)) - inter
    iou = (inter + 1e-6) / (union + 1e-6)
    return 1.0 - jnp.mean(iou)


if __name__ == "__main__":
    key = jax.random.PRNGKey(0)
    k1, k2, k3, k4 = jax.random.split(key, 4)

    # Case 1: small batch, ragged tail (N=20 rows with a 16-row tile).
    N1, C1 = 20, 32
    logits1 = jax.random.normal(k1, (N1, C1), dtype=jnp.float32)
    targets1 = jax.random.randint(k2, (N1,), 0, C1, dtype=jnp.int32)
    loss1 = iou_loss(logits1, targets1)
    jax.block_until_ready(loss1)
    ref1 = iou_loss_ref(logits1, targets1)
    assert jnp.allclose(loss1, ref1, atol=1e-5, rtol=1e-5), (loss1, ref1)

    # Case 2: multi-tile "parallel" grid with an explicit small tile cap.
    N2, C2 = 264, 48
    logits2 = jax.random.normal(k3, (N2, C2), dtype=jnp.float32)
    targets2 = jax.random.randint(k4, (N2,), 0, C2, dtype=jnp.int32)
    loss2 = iou_loss(logits2, targets2, tile_cap=64)
    jax.block_until_ready(loss2)
    ref2 = iou_loss_ref(logits2, targets2)
    assert jnp.allclose(loss2, ref2, atol=1e-5, rtol=1e-5), (loss2, ref2)

    print("KERNEL_OK")
</pallas_src>

<mosaic_0001>
module attributes {stable_mosaic.version = 11 : i64} {
  func.func @_iou_loss_kernel(%arg0: i32, %arg1: memref<16x32xf32, #tpu.memory_space<vmem>>, %arg2: memref<16x1xi32, #tpu.memory_space<vmem>>, %arg3: memref<16x1xf32, #tpu.memory_space<vmem>>) attributes {dimension_semantics = [#tpu.dimension_semantics<parallel>], iteration_bounds = array<i64: 2>, scalar_prefetch = 0 : i64, scratch_operands = 0 : i64, tpu.core_type = #tpu.core_type<tc>, window_params = [{transform_indices = @transform_0, window_bounds = array<i64: 16, 32>}, {transform_indices = @transform_1, window_bounds = array<i64: 16, 1>}, {transform_indices = @transform_2, window_bounds = array<i64: 16, 1>}]} {
    %c0 = arith.constant 0 : index
    %c0_0 = arith.constant 0 : index
    %0 = vector.load %arg1[%c0, %c0_0] : memref<16x32xf32, #tpu.memory_space<vmem>>, vector<16x32xf32>
    %1 = arith.negf %0 : vector<16x32xf32>
    %2 = math.exp %1 : vector<16x32xf32>
    %cst = arith.constant 1.000000e+00 : f32
    %3 = vector.broadcast %cst : f32 to vector<16x32xf32>
    %4 = arith.addf %3, %2 : vector<16x32xf32>
    %5 = arith.divf %3, %4 : vector<16x32xf32>
    %c0_1 = arith.constant 0 : index
    %c0_2 = arith.constant 0 : index
    %6 = vector.load %arg2[%c0_1, %c0_2] : memref<16x1xi32, #tpu.memory_space<vmem>>, vector<16x1xi32>
    %7 = tpu.iota {dimensions = array<i32: 1>} : vector<16x32xi32>
    %8 = vector.broadcast %6 : vector<16x1xi32> to vector<16x32xi32>
    %9 = arith.cmpi eq, %7, %8 : vector<16x32xi32>
    %cst_3 = arith.constant 0.000000e+00 : f32
    %10 = vector.broadcast %cst_3 : f32 to vector<16x32xf32>
    %11 = arith.select %9, %5, %10 : vector<16x32xi1>, vector<16x32xf32>
    %cst_4 = arith.constant dense<0.000000e+00> : vector<16xf32>
    %12 = vector.multi_reduction <add>, %11, %cst_4 [1] : vector<16x32xf32> to vector<16xf32>
    %13 = vector.shape_cast %12 : vector<16xf32> to vector<16x1xf32>
    %cst_5 = arith.constant dense<0.000000e+00> : vector<16xf32>
    %14 = vector.multi_reduction <add>, %5, %cst_5 [1] : vector<16x32xf32> to vector<16xf32>
    %15 = vector.shape_cast %14 : vector<16xf32> to vector<16x1xf32>
    %cst_6 = arith.constant 1.000000e+00 : f32
    %16 = vector.broadcast %cst_6 : f32 to vector<16x1xf32>
    %17 = arith.addf %15, %16 : vector<16x1xf32>
    %18 = arith.subf %17, %13 : vector<16x1xf32>
    %cst_7 = arith.constant 9.99999997E-7 : f32
    %19 = vector.broadcast %cst_7 : f32 to vector<16x1xf32>
    %20 = arith.addf %13, %19 : vector<16x1xf32>
    %cst_8 = arith.constant 9.99999997E-7 : f32
    %21 = vector.broadcast %cst_8 : f32 to vector<16x1xf32>
    %22 = arith.addf %18, %21 : vector<16x1xf32>
    %23 = arith.divf %20, %22 : vector<16x1xf32>
    %24 = tpu.iota {dimensions = array<i32: 0>} : vector<16x1xi32>
    %c16_i32 = arith.constant 16 : i32
    %25 = arith.muli %arg0, %c16_i32 : i32
    %26 = vector.broadcast %25 : i32 to vector<16x1xi32>
    %27 = arith.addi %24, %26 : vector<16x1xi32>
    %c20_i32 = arith.constant 20 : i32
    %28 = vector.broadcast %c20_i32 : i32 to vector<16x1xi32>
    %29 = arith.cmpi slt, %27, %28 : vector<16x1xi32>
    %cst_9 = arith.constant 0.000000e+00 : f32
    %30 = vector.broadcast %cst_9 : f32 to vector<16x1xf32>
    %31 = arith.select %29, %23, %30 : vector<16x1xi1>, vector<16x1xf32>
    %c0_10 = arith.constant 0 : index
    %c0_11 = arith.constant 0 : index
    %32 = vector.load %arg3[%c0_10, %c0_11] : memref<16x1xf32, #tpu.memory_space<vmem>>, vector<16x1xf32>
    tpu.vector_store %arg3[%c0_10, %c0_11], %31 {strides = array<i32>} : memref<16x1xf32, #tpu.memory_space<vmem>>, vector<16x1xf32>,
    return
  }
  func.func @transform_0(%arg0: i32) -> (i32, i32) {
    %c0_i32 = arith.constant 0 : i32
    %c0_i32_0 = arith.constant 0 : i32
    return %arg0, %c0_i32 : i32, i32
  }
  func.func @transform_1(%arg0: i32) -> (i32, i32) {
    %c0_i32 = arith.constant 0 : i32
    %c0_i32_0 = arith.constant 0 : i32
    return %arg0, %c0_i32 : i32, i32
  }
  func.func @transform_2(%arg0: i32) -> (i32, i32) {
    %c0_i32 = arith.constant 0 : i32
    %c0_i32_0 = arith.constant 0 : i32
    return %arg0, %c0_i32 : i32, i32
  }
}

</mosaic_0001>

<bundles_post_ra>
// kernel: tpu_custom_call.1
= control target key start
LH: loop header
LB: loop body
LE: loop exit
PB: predicated region body
PF: predicated region fallthrough
CT: control target
= control target key end

     0   :  { %s744_s9 = smov 0   ;;  %s746_s10 = smov 0   ;;  %s834_s0 = inlined_call_operand.vmem [shape: f32[20,32], index: 0, kind: input, shape index: {}]   ;;  %s835_s1 = inlined_call_operand.vmem [shape: s32[20,1], index: 1, kind: input, shape index: {}]   ;;  %s836_s2 = inlined_call_operand.vmem [shape: f32[20,1], index: 2, kind: output, shape index: {}]  }
   0x1   :  { %s748_s11 = smov 0  }
   0x2 LB: > { %s757_s12 = sadd.s32 4294967295, %s694_s11   ;;  %s759_s13 = sadd.s32 1, %s694_s11   ;;  %s694_s11 = sphi %s748_s11, %s840_s11   ;;  %s690_s10 = sphi %s746_s10, %s839_s10   ;;  %s686_s9 = sphi %s744_s9, %s838_s9  }
   0x3   : > { %s68_s14 = ssub.s32 %s694_s11, %s759_s13  ;;  %s71_s15 = sadd.s32 1, %s690_s10 }
   0x4   : > { %p69_p0 = scmp.eq.s32.totalorder %s68_s14, 0  ;;  %p81_p1 = scmp.ne.s32.totalorder %s690_s10, %s686_s9 }
   0x5   : > { %p82_p2 = scmp.eq.s32.totalorder %s757_s12, 1  ;;  %p509_p3 = scmp.ge.s32.totalorder %s694_s11, 1 }
   0x6   : > { %s767_s16 = scalar_select %p69_p0, %s690_s10, %s71_s15  }
   0x7   : > { %p769_p4 = por %p82_p2, %p81_p1  ;;  %p140_p5 = scmp.lt.s32.totalorder %s694_s11, 3 }
   0x9   : > { %p141_p6 = pnand %p509_p3, %p140_p5 }
   0xa   : > { %s774_s18 = sshll.u32 (!%p141_p6), %s757_s12, 1  ;;  %s517_s27 = sshll.u32 (!%p141_p6), %s757_s12, 4 }
   0xb   : > { %144 = sbr.rel (%p141_p6) target bundleno = 351 (0x15f), region = 28  ;;  %p179_p7 = scmp.lt.s32.totalorder (!%p141_p6), %s774_s18, 2 }
   0xc   : > { %s171_s28 = sand.u32 (!%p141_p6), 1, %s686_s9  }
   0xd   : > { %s510_s29 = sshll.u32 (!%p141_p6), %s171_s28, 4 }
   0xe   : > { %s790_s30 = scalar_lea.vmem (!%p141_p6), [#allocation2], %s510_s29  }
  0x10   : > { %v728_v0 = vmov 0   ;;  %s180_s19 = scalar_select %p179_p7, %s774_s18, 2  ;;  %vm235_vm0 = vcmask 261120   ;;  %v223_v15 = vlaneseq  ;;  %v264_v34 = vstv %s517_s27 }
  0x11   : > { %627 = vset.pattern.permute.xlu0 %v728_v0  ;;  %vm271_vm4 = vcmask 7168   ;;  %s282_s3 = ssub.s32 (%p769_p4), 3, %s774_s18  ;;  %s800_s6 = scalar_lea.vmem (%p769_p4), %s836_s2, %s517_s27  }
  0x12   : > { %s512_s20 = sshll.u32 %s180_s19, 3  ;;  %v224_v16 = vand.u32 127, %v223_v15  ;;  %v261_v33 = vshrl.u32 %v223_v15, 7  ;;  %p283_p8 = scmp.lt.s32.totalorder (%p769_p4), %s282_s3, 2 }
  0x13   : > { %s196_s23 = scalar_lea.vmem %s835_s1, %s512_s20  ;;  %s182_s26 = scalar_lea.vmem %s834_s0, %s512_s20 }
  0x14   : > { %v221_v1 = vld [vmem:[%s196_s23] sm:$0xff]  ;;  %v208_v3 = vld [vmem:[%s182_s26 + $0x8] sm:$0xff]  ;;  %v265_v35 = vadd.s32 %v264_v34, %v261_v33  ;;  %v262_v36 = vadd.s32 8, %v261_v33 }
  0x15   : > { %v207_v2 = vld [vmem:[%s182_s26] sm:$0xff]  ;;  %226 = vperm.xlu0 %627, %v221_v1   ;;  %v516_v5 = vmul.f32 -1.442695, %v208_v3  ;;  %v222_v6 = vld [vmem:[%s196_s23 + $0x8] sm:$0xff] }
  0x16   : > { %v515_v4 = vmul.f32 -1.442695, %v207_v2  ;;  %vm267_vm3 = vcmp.lt.s32.totalorder %v265_v35, 20  ;;  %v266_v39 = vadd.s32 %v264_v34, %v262_v36 }
  0x18   : > { %628 = vpow2.f32 %v515_v4  ;;  %vm268_vm5 = vcmp.lt.s32.totalorder %v266_v39, 20 }
  0x19   : > { %630 = vpow2.f32 %v516_v5  ;;  %229 = vperm.xlu0 %627, %v222_v6  }
  0x25   : > { %v629_v7 = vpop.eup %628 }
  0x26   : > { %v631_v8 = vpop.eup %630  ;;  %v215_v9 = vadd.f32 1.0, %v629_v7 }
  0x27   : > { %v216_v10 = vadd.f32 1.0, %v631_v8 }
  0x28   : > { %632 = vrcp.f32 %v215_v9 }
  0x29   : > { %634 = vrcp.f32 %v216_v10 }
  0x35   : > { %v633_v11 = vpop.eup %632 }
  0x36   : > { %v635_v12 = vpop.eup %634  ;;  %v242_v13 = vsel %vm235_vm0, %v633_v11, 0.0 }
  0x37   : > { %243 = vadd.xlane.f32.xlu1 %v242_v13  ;;  %v245_v14 = vsel %vm235_vm0, %v635_v12, 0.0 }
  0x3b   : > { %246 = vadd.xlane.f32.xlu1 %v245_v14 }
  0x90   : > { %v227_v17 = vpop.permute.xlu0 %226 }
  0x91   : > { %vm231_vm1 = vcmp.eq.s32.totalorder %v224_v16, %v227_v17 }
  0x92   : > { %v233_v18 = vsel %vm231_vm1, %v633_v11, 0.0 }
  0x93   : > { %v236_v19 = vsel %vm235_vm0, %v233_v18, 0.0 }
  0x94   : > { %v230_v20 = vpop.permute.xlu0 %229  ;;  %237 = vadd.xlane.f32.xlu0 %v236_v19 }
  0x95   : > { %vm232_vm2 = vcmp.eq.s32.totalorder %v224_v16, %v230_v20 }
  0x96   : > { %v234_v21 = vsel %vm232_vm2, %v635_v12, 0.0 }
  0x97   : > { %v239_v22 = vsel %vm235_vm0, %v234_v21, 0.0 }
  0x98   : > { %240 = vadd.xlane.f32.xlu1 %v239_v22 }
  0xc0   : > { %v244_v23 = vpop.xlane.xlu1 %243 }
  0xc1   : > { %v248_v25 = vadd.f32 1.0, %v244_v23 }
  0xc4   : > { %v247_v24 = vpop.xlane.xlu1 %246 }
  0xc5   : > { %v249_v28 = vadd.f32 1.0, %v247_v24 }
 0x11d   : > { %v238_v26 = vpop.xlane.xlu0 %237 }
 0x11e   : > { %v250_v27 = vsub.f32 %v248_v25, %v238_v26  ;;  %v252_v37 = vadd.f32 1e-06, %v238_v26 }
 0x120   : > { %v254_v29 = vadd.f32 1e-06, %v250_v27 }
 0x121   : > { %v241_v30 = vpop.xlane.xlu1 %240 }
 0x122   : > { %636 = vrcp.f32 %v254_v29  ;;  %v251_v31 = vsub.f32 %v249_v28, %v241_v30  ;;  %v253_v42 = vadd.f32 1e-06, %v241_v30 }
 0x124   : > { %v255_v32 = vadd.f32 1e-06, %v251_v31 }
 0x126   : > { %638 = vrcp.f32 %v255_v32 }
 0x12f   : > { %v637_v38 = vpop.eup %636 }
 0x130   : > { %v257_v40 = vmul.f32 %v637_v38, %v252_v37 }
 0x132   : > { %v269_v41 = vsel %vm267_vm3, %v257_v40, 0.0 }
 0x133   : > { %v639_v43 = vpop.eup %638  ;;  %272 = vst.msk [vmem:[%s790_s30] sm:$0xff] %vm271_vm4, %v269_v41  ;;  %280 = sbr.rel (!%p769_p4) target bundleno = 351 (0x15f), region = 32 }
 0x134   : > { %v259_v44 = vmul.f32 %v639_v43, %v253_v42 }
 0x136   : > { %v270_v45 = vsel %vm268_vm5, %v259_v44, 0.0 }
 0x137   : > { %273 = vst.msk [vmem:[%s790_s30 + $0x8] sm:$0xff] %vm271_vm4, %v270_v45 }
 0x138   : > { %s842_s3 = smov (!%p283_p8, %s282_s3), 2 }
 0x139   : > { %s520_s7 = sshll.u32 %s842_s3, 7 }
 0x13a   : > { %p523_p9 = scmp.eq.s32.totalorder %s520_s7, 0 }
 0x13b   : > { %s806_s8 = sshrl.u32 (!%p523_p9), %s842_s3, 1 }
 0x13c   : > { %291 = sbr.rel (%p523_p9) target bundleno = 351 (0x15f), region = 36  ;;  %p524_p10 = scmp.le.s32.totalorder (!%p523_p9), %s806_s8, 0 }
 0x141   : > { %456 = sbr.rel (%p524_p10) target bundleno = 334 (0x14e), region = 115  ;;  %s696_s9 = smov (!%p524_p10), %s800_s6  }
 0x142   : > { %s700_s11 = smov (!%p524_p10), %s790_s30   ;;  %s704_s12 = smov (!%p524_p10), 0  }
 0x143   : > { %s708_s14 = smov (!%p524_p10), 0  }
 0x146 LB: >> { %v356_v46 = vld [vmem:[%s702_s11] sm:$0xff]  ;;  %v358_v47 = vld [vmem:[%s702_s11 + $0x8] sm:$0xff]  ;;  %s360_s15 = sadd.s32 1, %s706_s12  ;;  %s350_s14 = sadd.s32 1, %s710_s14   ;;  %s710_s14 = sphi %s708_s14, %s350_s14   ;;  %s706_s12 = sphi %s704_s12, %s705_s12   ;;  %s702_s11 = sphi %s700_s11, %s365_s11   ;;  %s698_s9 = sphi %s696_s9, %s366_s9  }
 0x147   : >> { %357 = vst [vmem:[%s698_s9] sm:$0xff] %v356_v46  ;;  %359 = vst [vmem:[%s698_s9 + $0x8] sm:$0xff] %v358_v47  ;;  %p361_p11 = scmp.ge.s32.totalorder %s360_s15, %s806_s8  ;;  %p349_p12 = scmp.ge.s32.totalorder %s350_s14, %s806_s8 }
 0x149   : >> { %s844_s15 = smov (%p361_p11, %s360_s15), 0  ;;  %352 = sbr.rel (!%p349_p12) target bundleno = 326 (0x146), region = 121 }
 0x14a   : >> { %s525_s17 = sshll.u32 %s844_s15, 4  ;;  %s705_s12 = smov %s844_s15  }
 0x14b   : >> { %s365_s11 = scalar_lea.vmem %s790_s30, %s525_s17 [#allocation2]   ;;  %s366_s9 = scalar_lea.vmem %s800_s6, %s525_s17  }
 0x14e PF: > { %s816_s18 = sand.u32 1, %s842_s3   ;;  %s536_s19 = sshll.u32 %s806_s8, 4 }
 0x14f   : > { %s371_s20 = scalar_lea.vmem %s790_s30, %s536_s19 [#allocation2]   ;;  %s373_s21 = scalar_lea.vmem %s800_s6, %s536_s19  }
 0x150   : > { %p530_p13 = scmp.le.s32.totalorder %s816_s18, 0 }
 0x151   : > { %s712_s22 = smov (!%p530_p13), %s373_s21   ;;  %s716_s23 = smov (!%p530_p13), %s371_s20  }
 0x152   : > { %470 = sbr.rel (%p530_p13) target bundleno = 351 (0x15f), region = 126  ;;  %s720_s24 = smov (!%p530_p13), 0  }
 0x153   : > { %s724_s25 = smov (!%p530_p13), 0  }
 0x157 LB: >> { %v383_v48 = vld [vmem:[%s718_s23] sm:$0xff]  ;;  %s385_s26 = sadd.s32 1, %s722_s24  ;;  %s377_s25 = sadd.s32 1, %s726_s25   ;;  %s726_s25 = sphi %s724_s25, %s377_s25   ;;  %s722_s24 = sphi %s720_s24, %s721_s24   ;;  %s718_s23 = sphi %s716_s23, %s390_s23   ;;  %s714_s22 = sphi %s712_s22, %s391_s22  }
 0x158   : >> { %384 = vst [vmem:[%s714_s22] sm:$0xff] %v383_v48  ;;  %p386_p0 = scmp.ge.s32.totalorder %s385_s26, %s816_s18  ;;  %p376_p1 = scmp.ge.s32.totalorder %s377_s25, %s816_s18 }
 0x15a   : >> { %s846_s26 = smov (%p386_p0, %s385_s26), 0  ;;  %379 = sbr.rel (!%p376_p1) target bundleno = 343 (0x157), region = 132 }
 0x15b   : >> { %s531_s27 = sshll.u32 %s846_s26, 3  ;;  %s721_s24 = smov %s846_s26  }
 0x15c   : >> { %s390_s23 = scalar_lea.vmem %s371_s20, %s531_s27 [#allocation2]   ;;  %s391_s22 = scalar_lea.vmem %s373_s21, %s531_s27  }
 0x15f PF: > { %p9_p2 = scmp.ge.s32.totalorder %s759_s13, 4   ;;  %s838_s9 = smov %s690_s10 }
 0x160   : > { %s839_s10 = smov %s767_s16  ;;  %s840_s11 = smov %s759_s13 }
 0x161   :  { %11 = sbr.rel (!%p9_p2) target bundleno = 2 (0x2), region = 143 }

</bundles_post_ra>
